<compile_context>
chip_gen: v6e
topology: v6e:2x2x1
jax: 0.10.0
libtpu: 0.0.40
codegen_flags: <defaults>
</compile_context>

<pallas_src>
import jax
import jax.numpy as jnp
from jax.experimental import pallas as pl
from jax.experimental.pallas import tpu as pltpu


# ---------------------------------------------------------------------------
# Kernels
# ---------------------------------------------------------------------------

def _af_fused_kernel(x_ref, si_ref, w1x_ref, w1s_ref, b1_ref, w2_ref, b2_ref,
                     out_ref):
    """Fused path: whole (Bt, N, HWp) slab resident in VMEM."""
    x = x_ref[...]                                            # native dtype
    # Per-channel spatial sum, f32 accumulation without materializing a full
    # f32 copy of x.  The 1/(H*W) scale is folded into w1x by the wrapper.
    ctx = jnp.sum(x, axis=-1, dtype=jnp.float32)              # (Bt, N)
    si = si_ref[...].astype(jnp.float32)                      # (Bt, num_dim)

    # concat([ctx, si]) @ W1 as a split matmul + bias.
    h = (jnp.dot(ctx, w1x_ref[...], preferred_element_type=jnp.float32)
         + jnp.dot(si, w1s_ref[...], preferred_element_type=jnp.float32)
         + b1_ref[...])                                       # (Bt, M)
    h = jnp.where(h > 0, h, 0.01 * h)                         # LeakyReLU(0.01)
    m = jnp.dot(h, w2_ref[...], preferred_element_type=jnp.float32) + b2_ref[...]
    m = jax.nn.sigmoid(m)                                     # (Bt, M)

    # mask.view(-1, N, 1, 1) * x, multiplied in x's native dtype.
    out_ref[...] = x * m.astype(x.dtype)[:, :, None]


def _af_mask_kernel(x_ref, si_ref, w1x_ref, w1s_ref, b1_ref, w2_ref, b2_ref,
                    mask_ref, acc_ref):
    """Spatial-split pass 1: accumulate per-channel sums over HW tiles, then
    run the tiny MLP on the last HW step and emit the (Bt, M) mask."""
    hw = pl.program_id(1)

    @pl.when(hw == 0)
    def _():
        acc_ref[...] = jnp.zeros_like(acc_ref)

    acc_ref[...] += jnp.sum(x_ref[...], axis=-1, dtype=jnp.float32)  # (Bt, N)

    @pl.when(hw == pl.num_programs(1) - 1)
    def _():
        ctx = acc_ref[...]
        si = si_ref[...].astype(jnp.float32)
        h = (jnp.dot(ctx, w1x_ref[...], preferred_element_type=jnp.float32)
             + jnp.dot(si, w1s_ref[...], preferred_element_type=jnp.float32)
             + b1_ref[...])
        h = jnp.where(h > 0, h, 0.01 * h)
        m = jnp.dot(h, w2_ref[...], preferred_element_type=jnp.float32) + b2_ref[...]
        mask_ref[...] = jax.nn.sigmoid(m)


def _af_apply_kernel(mask_ref, x_ref, out_ref):
    """Spatial-split pass 2: out = mask[:, :, None] * x (native dtype)."""
    x = x_ref[...]
    out_ref[...] = x * mask_ref[...].astype(x.dtype)[:, :, None]


# ---------------------------------------------------------------------------
# Hardware budget helpers
# ---------------------------------------------------------------------------

def _tpu_vmem_and_cores():
    """(vmem_capacity_bytes, tensorcores_per_device) with safe fallbacks."""
    vmem_capacity = 64 * 1024 * 1024          # conservative default (v7x-sized)
    num_cores = 1
    try:
        info = pltpu.get_tpu_info()
        vmem_capacity = int(getattr(info, "vmem_capacity_bytes", vmem_capacity))
    except Exception:
        pass
    try:
        kind = jax.devices()[0].device_kind.lower()
        # Megacore generations expose >1 TensorCore per JAX device.
        if any(tag in kind for tag in ("v7", "v4", "v5p", "v5 p")):
            num_cores = 2
    except Exception:
        pass
    return vmem_capacity, num_cores


def _largest_divisor_leq(n, cap):
    cap = max(1, min(n, cap))
    for d in range(cap, 0, -1):
        if n % d == 0:
            return d
    return 1


# ---------------------------------------------------------------------------
# Wrapper
# ---------------------------------------------------------------------------

def af_module_side_info(x, side_info, w1, b1, w2, b2, *, max_block_bytes=None):
    """x: (B, N, H, W) NCHW; side_info: (B, num_dim); w1: (N+num_dim, M);
    b1: (M,); w2: (M, M); b2: (M,).  Linear weights are stored (in, out),
    i.e. the transpose of torch's nn.Linear.weight."""
    B, N, H, W = x.shape
    num_dim = side_info.shape[1]
    M = w1.shape[1]
    assert w1.shape[0] == N + num_dim
    assert M == N, "mask.view(-1, c_in, 1, 1) requires M == N"

    HW = H * W
    HWp = ((HW + 127) // 128) * 128             # lane-align the spatial axis
    x_flat = x.reshape(B, N, HW)                # free metadata reshape
    if HWp != HW:
        x_flat = jnp.pad(x_flat, ((0, 0), (0, 0), (0, HWp - HW)))

    # Fold the 1/(H*W) mean scale into the context slab of W1 (cast f32 first).
    w1x = w1[:N, :].astype(jnp.float32) / jnp.float32(HW)      # (N, M)
    w1s = w1[N:, :].astype(jnp.float32)                        # (num_dim, M)
    b1_2d = b1.reshape(1, M).astype(jnp.float32)
    w2_f = w2.astype(jnp.float32)
    b2_2d = b2.reshape(1, M).astype(jnp.float32)

    # ----- per-generation VMEM / core budget -------------------------------
    itemsize = x.dtype.itemsize
    sublane_pack = max(8, 32 // max(itemsize, 1))              # 8 f32 / 16 bf16 / 32 i8
    n_pad = ((N + sublane_pack - 1) // sublane_pack) * sublane_pack
    per_sample_bytes = n_pad * HWp * itemsize                  # padded VMEM footprint

    vmem_capacity, num_cores = _tpu_vmem_and_cores()
    vmem_limit = int(min(64 * 1024 * 1024, (vmem_capacity * 3) // 4))
    weight_bytes = int(4 * (w1x.size + w1s.size + b1_2d.size
                            + w2_f.size + b2_2d.size))
    # x and out blocks are each double-buffered -> 4 live x-sized blocks.
    avail = int(vmem_limit * 0.6) - 2 * weight_bytes
    block_budget = max(avail // 4, 128 * 1024)
    if max_block_bytes is not None:
        block_budget = min(block_budget, int(max_block_bytes))

    num_dim_b = num_dim

    if per_sample_bytes <= block_budget:
        # ------------------------- fused single-pass path -------------------
        bt_cap = block_budget // per_sample_bytes
        if num_cores > 1:
            # Guarantee >=2 grid steps per TensorCore (when the batch allows)
            # so each core keeps i+1 prefetch / i-1 writeback overlap.
            min_steps = min(B, 2 * num_cores)
            bt_cap = min(bt_cap, max(1, B // min_steps))
        Bt = _largest_divisor_leq(B, bt_cap)
        grid = (B // Bt,)

        bytes_accessed = (2 * B * N * HWp * itemsize
                          + B * num_dim * side_info.dtype.itemsize
                          + weight_bytes)
        flops = (2 * B * (N + num_dim) * M       # first Linear
                 + 2 * B * M * M                 # second Linear
                 + 2 * B * N * HWp)              # spatial sum + mask multiply
        cost = pl.CostEstimate(flops=flops, transcendentals=B * M,
                               bytes_accessed=bytes_accessed)

        out_flat = pl.pallas_call(
            _af_fused_kernel,
            out_shape=jax.ShapeDtypeStruct((B, N, HWp), x.dtype),
            grid=grid,
            in_specs=[
                pl.BlockSpec((Bt, N, HWp), lambda b: (b, 0, 0)),    # x
                pl.BlockSpec((Bt, num_dim_b), lambda b: (b, 0)),    # side_info
                pl.BlockSpec((N, M), lambda b: (0, 0)),             # w1 (ctx)
                pl.BlockSpec((num_dim_b, M), lambda b: (0, 0)),     # w1 (side)
                pl.BlockSpec((1, M), lambda b: (0, 0)),             # b1
                pl.BlockSpec((M, M), lambda b: (0, 0)),             # w2
                pl.BlockSpec((1, M), lambda b: (0, 0)),             # b2
            ],
            out_specs=pl.BlockSpec((Bt, N, HWp), lambda b: (b, 0, 0)),
            compiler_params=pltpu.CompilerParams(
                dimension_semantics=("parallel",),
                vmem_limit_bytes=vmem_limit),
            cost_estimate=cost,
        )(x_flat, side_info, w1x, w1s, b1_2d, w2_f, b2_2d)
    else:
        # --------------------- spatial-split two-pass path ------------------
        # One sample's (N, HWp) slab exceeds the VMEM block budget (e.g. v7x
        # 64 MiB at production shapes): split the HW axis.
        Bt = 1
        k128 = HWp // 128
        d_cap = max(1, block_budget // (n_pad * 128 * itemsize))
        d = _largest_divisor_leq(k128, d_cap)
        HWt = 128 * d
        n_hw = HWp // HWt
        grid = (B // Bt, n_hw)

        mask = pl.pallas_call(
            _af_mask_kernel,
            out_shape=jax.ShapeDtypeStruct((B, M), jnp.float32),
            grid=grid,
            in_specs=[
                pl.BlockSpec((Bt, N, HWt), lambda b, h: (b, 0, h)),  # x
                pl.BlockSpec((Bt, num_dim_b), lambda b, h: (b, 0)),  # side_info
                pl.BlockSpec((N, M), lambda b, h: (0, 0)),           # w1 (ctx)
                pl.BlockSpec((num_dim_b, M), lambda b, h: (0, 0)),   # w1 (side)
                pl.BlockSpec((1, M), lambda b, h: (0, 0)),           # b1
                pl.BlockSpec((M, M), lambda b, h: (0, 0)),           # w2
                pl.BlockSpec((1, M), lambda b, h: (0, 0)),           # b2
            ],
            out_specs=pl.BlockSpec((Bt, M), lambda b, h: (b, 0)),
            scratch_shapes=[pltpu.VMEM((Bt, N), jnp.float32)],
            compiler_params=pltpu.CompilerParams(
                dimension_semantics=("parallel", "arbitrary"),
                vmem_limit_bytes=vmem_limit),
        )(x_flat, side_info, w1x, w1s, b1_2d, w2_f, b2_2d)

        out_flat = pl.pallas_call(
            _af_apply_kernel,
            out_shape=jax.ShapeDtypeStruct((B, N, HWp), x.dtype),
            grid=grid,
            in_specs=[
                pl.BlockSpec((Bt, M), lambda b, h: (b, 0)),          # mask
                pl.BlockSpec((Bt, N, HWt), lambda b, h: (b, 0, h)),  # x
            ],
            out_specs=pl.BlockSpec((Bt, N, HWt), lambda b, h: (b, 0, h)),
            compiler_params=pltpu.CompilerParams(
                dimension_semantics=("parallel", "parallel"),
                vmem_limit_bytes=vmem_limit),
        )(mask, x_flat)

    if HWp != HW:
        out_flat = out_flat[:, :, :HW]
    return out_flat.reshape(B, N, H, W)


# ---------------------------------------------------------------------------
# Pure-JAX reference (mirrors the PyTorch module)
# ---------------------------------------------------------------------------

def _reference(x, side_info, w1, b1, w2, b2):
    N = x.shape[1]
    ctx = jnp.mean(x, axis=(2, 3))
    ci = jnp.concatenate([ctx, side_info], axis=1)
    h = ci @ w1 + b1
    h = jnp.where(h > 0, h, 0.01 * h)
    m = jax.nn.sigmoid(h @ w2 + b2)
    return m.reshape(-1, N, 1, 1) * x


if __name__ == "__main__":
    # Small deterministic shapes: B=2, N=M=4 channels, num_dim=8, 16x16 spatial.
    B, N, M, num_dim, H, W = 2, 4, 4, 8, 16, 16

    key = jax.random.PRNGKey(0)
    kx, ks, kw1, kb1, kw2, kb2 = jax.random.split(key, 6)

    x = jax.random.normal(kx, (B, N, H, W), dtype=jnp.float32)
    side_info = jax.random.normal(ks, (B, num_dim), dtype=jnp.float32)

    # Deterministic synthetic parameters (Linear weights stored as (in, out)).
    w1 = jax.random.normal(kw1, (N + num_dim, M), dtype=jnp.float32) * 0.2
    b1 = jax.random.normal(kb1, (M,), dtype=jnp.float32) * 0.1
    w2 = jax.random.normal(kw2, (M, M), dtype=jnp.float32) * 0.2
    b2 = jax.random.normal(kb2, (M,), dtype=jnp.float32) * 0.1

    ref = _reference(x, side_info, w1, b1, w2, b2)

    # 1) Fused single-pass path.
    out = jax.block_until_ready(af_module_side_info(x, side_info, w1, b1, w2, b2))
    assert out.shape == (B, N, H, W)
    assert jnp.allclose(out, ref, atol=1e-5, rtol=1e-5), "fused path mismatch"

    # 2) Force the spatial-split path (the v7x big-working-set fallback) on
    #    the same small problem so both code paths are exercised.
    small_budget = 8 * 128 * x.dtype.itemsize      # one (N_pad, 128) lane tile
    out2 = jax.block_until_ready(
        af_module_side_info(x, side_info, w1, b1, w2, b2,
                            max_block_bytes=small_budget))
    assert jnp.allclose(out2, ref, atol=1e-5, rtol=1e-5), "split path mismatch"

    # 3) Unaligned spatial size (10x10 -> HW=100 padded to 128 lanes).
    x3 = jax.random.normal(kx, (B, N, 10, 10), dtype=jnp.float32)
    ref3 = _reference(x3, side_info, w1, b1, w2, b2)
    out3 = jax.block_until_ready(af_module_side_info(x3, side_info, w1, b1, w2, b2))
    assert jnp.allclose(out3, ref3, atol=1e-5, rtol=1e-5), "padded-HW mismatch"

    print("KERNEL_OK")
</pallas_src>

<mosaic_0001>
module attributes {stable_mosaic.version = 11 : i64} {
  func.func @_af_fused_kernel(%arg0: i32, %arg1: memref<2x4x256xf32, #tpu.memory_space<vmem>>, %arg2: memref<2x8xf32, #tpu.memory_space<vmem>>, %arg3: memref<4x4xf32, #tpu.memory_space<vmem>>, %arg4: memref<8x4xf32, #tpu.memory_space<vmem>>, %arg5: memref<1x4xf32, #tpu.memory_space<vmem>>, %arg6: memref<4x4xf32, #tpu.memory_space<vmem>>, %arg7: memref<1x4xf32, #tpu.memory_space<vmem>>, %arg8: memref<2x4x256xf32, #tpu.memory_space<vmem>>) attributes {dimension_semantics = [#tpu.dimension_semantics<parallel>], iteration_bounds = array<i64: 1>, scalar_prefetch = 0 : i64, scratch_operands = 0 : i64, tpu.core_type = #tpu.core_type<tc>, window_params = [{transform_indices = @transform_0, window_bounds = array<i64: 2, 4, 256>}, {transform_indices = @transform_1, window_bounds = array<i64: 2, 8>}, {pipeline_mode = #tpu.pipeline_mode<synchronous>, transform_indices = @transform_2, window_bounds = array<i64: 4, 4>}, {pipeline_mode = #tpu.pipeline_mode<synchronous>, transform_indices = @transform_3, window_bounds = array<i64: 8, 4>}, {pipeline_mode = #tpu.pipeline_mode<synchronous>, transform_indices = @transform_4, window_bounds = array<i64: 1, 4>}, {pipeline_mode = #tpu.pipeline_mode<synchronous>, transform_indices = @transform_5, window_bounds = array<i64: 4, 4>}, {pipeline_mode = #tpu.pipeline_mode<synchronous>, transform_indices = @transform_6, window_bounds = array<i64: 1, 4>}, {transform_indices = @transform_7, window_bounds = array<i64: 2, 4, 256>}]} {
    %c0 = arith.constant 0 : index
    %c0_0 = arith.constant 0 : index
    %c0_1 = arith.constant 0 : index
    %0 = vector.load %arg1[%c0, %c0_0, %c0_1] : memref<2x4x256xf32, #tpu.memory_space<vmem>>, vector<2x4x256xf32>
    %cst = arith.constant dense<0.000000e+00> : vector<2x4xf32>
    %1 = vector.multi_reduction <add>, %0, %cst [2] : vector<2x4x256xf32> to vector<2x4xf32>
    %c0_2 = arith.constant 0 : index
    %c0_3 = arith.constant 0 : index
    %2 = vector.load %arg2[%c0_2, %c0_3] : memref<2x8xf32, #tpu.memory_space<vmem>>, vector<2x8xf32>
    %c0_4 = arith.constant 0 : index
    %c0_5 = arith.constant 0 : index
    %3 = vector.load %arg3[%c0_4, %c0_5] : memref<4x4xf32, #tpu.memory_space<vmem>>, vector<4x4xf32>
    %cst_6 = arith.constant dense<0.000000e+00> : vector<2x4xf32>
    %4 = tpu.matmul %1, %3, %cst_6 {dimension_numbers = #tpu.dot_dimension_numbers<[1], [0], [0], [1], [0, 0, 1, 1], [], []>} : vector<2x4xf32>, vector<4x4xf32>, vector<2x4xf32> -> vector<2x4xf32>
    %c0_7 = arith.constant 0 : index
    %c0_8 = arith.constant 0 : index
    %5 = vector.load %arg4[%c0_7, %c0_8] : memref<8x4xf32, #tpu.memory_space<vmem>>, vector<8x4xf32>
    %cst_9 = arith.constant dense<0.000000e+00> : vector<2x4xf32>
    %6 = tpu.matmul %2, %5, %cst_9 {dimension_numbers = #tpu.dot_dimension_numbers<[1], [0], [0], [1], [0, 0, 1, 1], [], []>} : vector<2x8xf32>, vector<8x4xf32>, vector<2x4xf32> -> vector<2x4xf32>
    %7 = arith.addf %4, %6 : vector<2x4xf32>
    %c0_10 = arith.constant 0 : index
    %c0_11 = arith.constant 0 : index
    %8 = vector.load %arg5[%c0_10, %c0_11] : memref<1x4xf32, #tpu.memory_space<vmem>>, vector<1x4xf32>
    %9 = vector.broadcast %8 : vector<1x4xf32> to vector<2x4xf32>
    %10 = arith.addf %7, %9 : vector<2x4xf32>
    %cst_12 = arith.constant 0.000000e+00 : f32
    %11 = vector.broadcast %cst_12 : f32 to vector<2x4xf32>
    %12 = arith.cmpf ogt, %10, %11 : vector<2x4xf32>
    %cst_13 = arith.constant 0.00999999977 : f32
    %13 = vector.broadcast %cst_13 : f32 to vector<2x4xf32>
    %14 = arith.mulf %13, %10 : vector<2x4xf32>
    %15 = arith.select %12, %10, %14 : vector<2x4xi1>, vector<2x4xf32>
    %c0_14 = arith.constant 0 : index
    %c0_15 = arith.constant 0 : index
    %16 = vector.load %arg6[%c0_14, %c0_15] : memref<4x4xf32, #tpu.memory_space<vmem>>, vector<4x4xf32>
    %cst_16 = arith.constant dense<0.000000e+00> : vector<2x4xf32>
    %17 = tpu.matmul %15, %16, %cst_16 {dimension_numbers = #tpu.dot_dimension_numbers<[1], [0], [0], [1], [0, 0, 1, 1], [], []>} : vector<2x4xf32>, vector<4x4xf32>, vector<2x4xf32> -> vector<2x4xf32>
    %c0_17 = arith.constant 0 : index
    %c0_18 = arith.constant 0 : index
    %18 = vector.load %arg7[%c0_17, %c0_18] : memref<1x4xf32, #tpu.memory_space<vmem>>, vector<1x4xf32>
    %19 = vector.broadcast %18 : vector<1x4xf32> to vector<2x4xf32>
    %20 = arith.addf %17, %19 : vector<2x4xf32>
    %21 = arith.negf %20 : vector<2x4xf32>
    %22 = math.exp %21 : vector<2x4xf32>
    %cst_19 = arith.constant 1.000000e+00 : f32
    %23 = vector.broadcast %cst_19 : f32 to vector<2x4xf32>
    %24 = arith.addf %23, %22 : vector<2x4xf32>
    %25 = arith.divf %23, %24 : vector<2x4xf32>
    %26 = vector.shape_cast %25 : vector<2x4xf32> to vector<2x4x1xf32>
    %27 = vector.broadcast %26 : vector<2x4x1xf32> to vector<2x4x256xf32>
    %28 = arith.mulf %0, %27 : vector<2x4x256xf32>
    %c0_20 = arith.constant 0 : index
    %c0_21 = arith.constant 0 : index
    %c0_22 = arith.constant 0 : index
    %29 = vector.load %arg8[%c0_20, %c0_21, %c0_22] : memref<2x4x256xf32, #tpu.memory_space<vmem>>, vector<2x4x256xf32>
    tpu.vector_store %arg8[%c0_20, %c0_21, %c0_22], %28 {strides = array<i32>} : memref<2x4x256xf32, #tpu.memory_space<vmem>>, vector<2x4x256xf32>,
    return
  }
  func.func @transform_0(%arg0: i32) -> (i32, i32, i32) {
    %c0_i32 = arith.constant 0 : i32
    %c0_i32_0 = arith.constant 0 : i32
    %c0_i32_1 = arith.constant 0 : i32
    return %arg0, %c0_i32, %c0_i32_0 : i32, i32, i32
  }
  func.func @transform_1(%arg0: i32) -> (i32, i32) {
    %c0_i32 = arith.constant 0 : i32
    %c0_i32_0 = arith.constant 0 : i32
    return %arg0, %c0_i32 : i32, i32
  }
  func.func @transform_2(%arg0: i32) -> (i32, i32) {
    %c0_i32 = arith.constant 0 : i32
    %c0_i32_0 = arith.constant 0 : i32
    %c0_i32_1 = arith.constant 0 : i32
    return %c0_i32, %c0_i32_0 : i32, i32
  }
  func.func @transform_3(%arg0: i32) -> (i32, i32) {
    %c0_i32 = arith.constant 0 : i32
    %c0_i32_0 = arith.constant 0 : i32
    %c0_i32_1 = arith.constant 0 : i32
    return %c0_i32, %c0_i32_0 : i32, i32
  }
  func.func @transform_4(%arg0: i32) -> (i32, i32) {
    %c0_i32 = arith.constant 0 : i32
    %c0_i32_0 = arith.constant 0 : i32
    %c0_i32_1 = arith.constant 0 : i32
    return %c0_i32, %c0_i32_0 : i32, i32
  }
  func.func @transform_5(%arg0: i32) -> (i32, i32) {
    %c0_i32 = arith.constant 0 : i32
    %c0_i32_0 = arith.constant 0 : i32
    %c0_i32_1 = arith.constant 0 : i32
    return %c0_i32, %c0_i32_0 : i32, i32
  }
  func.func @transform_6(%arg0: i32) -> (i32, i32) {
    %c0_i32 = arith.constant 0 : i32
    %c0_i32_0 = arith.constant 0 : i32
    %c0_i32_1 = arith.constant 0 : i32
    return %c0_i32, %c0_i32_0 : i32, i32
  }
  func.func @transform_7(%arg0: i32) -> (i32, i32, i32) {
    %c0_i32 = arith.constant 0 : i32
    %c0_i32_0 = arith.constant 0 : i32
    %c0_i32_1 = arith.constant 0 : i32
    return %arg0, %c0_i32, %c0_i32_0 : i32, i32, i32
  }
}

</mosaic_0001>

<bundles_post_ra>
// kernel: tpu_custom_call.1
= control target key start
LH: loop header
LB: loop body
LE: loop exit
PB: predicated region body
PF: predicated region fallthrough
CT: control target
= control target key end

     0   :  { %12 = vsyncpa [#allocation3], 0  ;;  %s562_s0 = inlined_call_operand.hbm [shape: f32[2,4,256], index: 0, kind: input, shape index: {}]   ;;  %s563_s1 = inlined_call_operand.vmem [shape: f32[2,8], index: 1, kind: input, shape index: {}]   ;;  %s564_s2 = inlined_call_operand.vmem [shape: f32[4,4], index: 2, kind: input, shape index: {}]   ;;  %s565_s3 = inlined_call_operand.vmem [shape: f32[8,4], index: 3, kind: input, shape index: {}]   ;;  %s566_s4 = inlined_call_operand.vmem [shape: f32[1,4], index: 4, kind: input, shape index: {}]   ;;  %s567_s5 = inlined_call_operand.vmem [shape: f32[4,4], index: 5, kind: input, shape index: {}]   ;;  %s568_s6 = inlined_call_operand.vmem [shape: f32[1,4], index: 6, kind: input, shape index: {}]   ;;  %s569_s7 = inlined_call_operand.hbm [shape: f32[2,4,256], index: 7, kind: output, shape index: {}]  }
   0x1   :  { %13 = vsyncpa [#allocation4], 0  ;;  %s467_s24 = smov [#allocation2]  }
   0x2   :  { %s19_s25 = sshll.u32 %s467_s24, 4  ;;  %s20_s25 = int_to_ptr.vmem [resolvable:$true] %s19_s25 }
   0x3   :  { %s431_s26 = scalar_lea.vmem %s20_s25, 256  ;;  %p436_p1 = scmp.lt.s32.totalorder %s20_s25, %s20_s25 }
   0x4   :  { %p432_p0 = scmp.ne.s32.totalorder %s20_s25, %s431_s26  ;;  %p437_p2 = scmp.lt.s32.totalorder %s431_s26, %s431_s26 }
   0x6   :  { %p438_p3 = por %p437_p2, %p436_p1 }
   0x8   :  { %p439_p4 = pnand %p438_p3, %p432_p0 }
   0xa   :  { %442 = shalt.err (!%p439_p4)
}
   0xb   :  { %s468_s27 = smov 128   ;;  %s469_s28 = smov 8  }
   0xc   :  { %25 = dma.hbm_to_vmem [thread:$0]  %s562_s0, 256, %s20_s25, [#allocation3], %s468_s27, %s468_s27, %s469_s28  }
   0xd   :  { %463 = dma.done.wait [#allocation3], 256  }
   0xe   :  { %464 = vsyncadd [#allocation3], 4294967040  ;;  %vm49_vm0 = vcmask 1043456   ;;  %v520_v0 = vld [vmem:[#allocation2] sm:$0xff]  ;;  %v522_v1 = vld [vmem:[#allocation2 + $0x8] sm:$0xff]  ;;  %v470_v10 = vmov 0.0   ;;  %v139_v14 = vlaneseq }
   0xf   :  { %v45_v2 = vcombine.high %v520_v0, %v520_v0  ;;  %v50_v3 = vsel %vm49_vm0, %v520_v0, 0.0  ;;  %v46_v4 = vcombine.high %v522_v1, %v522_v1  ;;  %v55_v6 = vsel %vm49_vm0, %v522_v1, 0.0  ;;  %395 = vmatprep.subr.mxu0 %v470_v10  ;;  %400 = vmatprep.subr.mxu1 %v470_v10  ;;  %v62_v11 = vld [vmem:[%s565_s3] sm:$0xff] }
  0x10   :  { %396 = vmatpush3.msra.mxu0 %v62_v11  ;;  %vm471_vm1 = vmmov 0   ;;  %v60_v12 = vld [vmem:[%s563_s1] sm:$0x3]  ;;  %vm63_vm2 = vcmask 64512   ;;  %v140_v15 = vand.u32 127, %v139_v14  ;;  %v142_v16 = vshrl.u32 %v139_v14, 7 }
  0x11   :  { %v51_v5 = vsel %vm49_vm0, %v45_v2, 0.0  ;;  %v56_v7 = vsel %vm49_vm0, %v46_v4, 0.0  ;;  %397 = vmatprep.mubr.msk.f32.mxu0 %vm471_vm1, %v470_v10  ;;  %v61_v13 = vld [vmem:[%s564_s2] sm:$0xf]  ;;  %402 = vmatprep.mubr.msk.f32.mxu1 %vm471_vm1, %v470_v10  ;;  %vm149_vm3 = vcmask 1041409   ;;  %vm151_vm4 = vcmask 31744  }
  0x12   :  { %v52_v8 = vadd.f32 %v51_v5, %v50_v3  ;;  %v57_v9 = vadd.f32 %v56_v7, %v55_v6  ;;  %398 = vmatmul.mubr.msk.f32.vlgmr.msra.gmra.mxu0 %vm63_vm2, %v60_v12  ;;  %401 = vmatpush3.msk.msra.mxu1 %vm49_vm0, %v61_v13  ;;  %v143_v18 = vsub.s32 %v140_v15, %v142_v16  ;;  %v238_v25 = vld [vmem:[%s567_s5] sm:$0xf]  ;;  %v330_v40 = vsub.s32 0, %v142_v16 }
  0x13   :  { %405 = vmatprep.subr.mxu0 %v470_v10  ;;  %407 = vmatprep.mubr.msk.f32.mxu0 %vm471_vm1, %v470_v10  ;;  %v384_v27 = vld [vmem:[%s566_s4] ss:$0 sm:$0xff]  ;;  %v337_v43 = vsub.s32 1, %v142_v16  ;;  %v472_v45 = vmov 839922192   ;;  %s473_s4 = smov [#allocation5]  }
  0x14   :  { %53 = vadd.xlane.f32.xlu0 %v52_v8  ;;  %406 = vmatpush3.msk.msra.mxu0 %vm49_vm0, %v238_v25  ;;  %v385_v33 = vld [vmem:[%s568_s6] ss:$0 sm:$0xff]  ;;  %v345_v46 = vunpack.c.l.s4 %v472_v45  ;;  %s369_s5 = sshll.u32 %s473_s4, 4  ;;  %s370_s5 = int_to_ptr.vmem [resolvable:$true] %s369_s5 }
  0x15   :  { %s443_s6 = scalar_lea.vmem %s370_s5, 256  ;;  %p448_p6 = scmp.lt.s32.totalorder %s370_s5, %s370_s5 }
  0x16   :  { %v346_v47 = vunpack.c.0.s8 %v345_v46  ;;  %p444_p5 = scmp.ne.s32.totalorder %s370_s5, %s443_s6  ;;  %p449_p7 = scmp.lt.s32.totalorder %s443_s6, %s443_s6 }
  0x18   :  { %58 = vadd.xlane.f32.xlu0 %v57_v9  ;;  %v349_v48 = vsub.s32 %v346_v47, %v142_v16  ;;  %p450_p8 = por %p449_p7, %p448_p6 }
  0x1a   :  { %p451_p9 = pnand %p450_p8, %p444_p5 }
  0x9d   :  { %v54_v17 = vpop.xlane.xlu0 %53 }
  0x9e   :  { %v144_v20 = vrot.slane %v54_v17, %v143_v18 }
  0xa1   :  { %v59_v19 = vpop.xlane.xlu0 %58 }
  0xa2   :  { %v148_v21 = vrot.slane %v59_v19, %v143_v18 }
  0xa4   :  { %v150_v22 = vsel %vm149_vm3, %v148_v21, %v144_v20 }
  0xa5   :  { %403 = vmatmul.mubr.msk.f32.vlgmr.msra.gmra.mxu1 %vm151_vm4, %v150_v22 }
  0xd2   :  { %v133_v23 = vpop.f32.mrf.mxu0 }
  0xd4   :  { %v399_v24 = vpop.f32.mrf.mxu0 }
 0x165   :  { %v223_v26 = vpop.f32.mrf.mxu1 }
 0x166   :  { %v224_v28 = vadd.f32 %v223_v26, %v133_v23 }
 0x167   :  { %v404_v29 = vpop.f32.mrf.mxu1 }
 0x168   :  { %v234_v30 = vadd.f32 %v384_v27, %v224_v28 }
 0x16a   :  { %vm235_vm5 = vcmp.gt.f32.partialorder %v234_v30, 0.0  ;;  %v236_v31 = vmul.f32 0.01, %v234_v30 }
 0x16c   :  { %v237_v32 = vsel %vm235_vm5, %v234_v30, %v236_v31 }
 0x16d   :  { %408 = vmatmul.mubr.msk.f32.vlgmr.msra.gmra.mxu0 %vm151_vm4, %v237_v32 }
 0x22d   :  { %v318_v34 = vpop.f32.mrf.mxu0 }
 0x22e   :  { %v319_v35 = vadd.f32 %v385_v33, %v318_v34 }
 0x22f   :  { %v409_v36 = vpop.f32.mrf.mxu0 }
 0x230   :  { %v388_v37 = vmul.f32 -1.442695, %v319_v35 }
 0x232   :  { %419 = vpow2.f32 %v388_v37 }
 0x23f   :  { %v420_v38 = vpop.eup %419 }
 0x240   :  { %v325_v39 = vadd.f32 1.0, %v420_v38 }
 0x242   :  { %421 = vrcp.f32 %v325_v39 }
 0x24f   :  { %v422_v41 = vpop.eup %421 }
 0x250   :  { %v331_v42 = vrot.slane %v422_v41, %v330_v40  ;;  %v338_v44 = vrot.slane %v422_v41, %v337_v43 }
 0x252   :  { %333 = vbcast.lane.b32.xlu1 %v331_v42, 256 }
 0x256   :  { %340 = vbcast.lane.b32.xlu1 %v338_v44, 256 }
 0x2c4   :  { %v334_v49 = vpop.permute.xlu1 %333 }
 0x2c5   :  { %v350_v50 = vrot.slane %v334_v49, %v349_v48 }
 0x2c7   :  { %v360_v51 = vmul.f32 %v350_v50, %v520_v0 }
 0x2c8   :  { %v341_v52 = vpop.permute.xlu1 %340 }
 0x2c9   :  { %362 = vst [vmem:[#allocation5] sm:$0xff] %v360_v51  ;;  %v357_v53 = vrot.slane %v341_v52, %v349_v48 }
 0x2cb   :  { %v361_v54 = vmul.f32 %v357_v53, %v522_v1 }
 0x2cd   :  { %363 = vst [vmem:[#allocation5 + $0x8] sm:$0xff] %v361_v54 }
 0x2ce   :  { %454 = shalt.err (!%p451_p9)
}
 0x2cf   :  { %375 = dma.vmem_to_hbm [thread:$0]  %s370_s5, 256, %s569_s7, [#allocation4], %s468_s27, %s468_s27, %s469_s28  }
 0x2d0   :  { %465 = dma.done.wait [#allocation4], 256  }
 0x2d1   :  { %466 = vsyncadd [#allocation4], 4294967040 }
 0x2d2   :  { %379 = vsyncpa [#allocation3], 1 }
 0x2d3   :  { %380 = vsyncpa [#allocation4], 1 }

</bundles_post_ra>
